<compile_context>
chip_gen: v6e
topology: v6e:2x2x1
jax: 0.10.0
libtpu: 0.0.40
codegen_flags: <defaults>
</compile_context>

<pallas_src>
from functools import partial

import jax
import jax.numpy as jnp
from jax.experimental import pallas as pl
from jax.experimental.pallas import tpu as pltpu

LANE = 128
SUBLANE = 8


def _round_up(v, m):
    return ((v + m - 1) // m) * m


def _sublane_multiple(*dtypes):
    # Sublane tiling requirement per dtype: f32 -> 8, bf16 -> 16, int8/fp8 -> 32.
    return max(max(8, 32 // jnp.dtype(d).itemsize) for d in dtypes)


def _charbonnier_kernel(x_ref, y_ref, out_ref, *, eps, n, steps, need_mask):
    p = pl.program_id(0)   # parallel axis (megacore split on v7x)
    i = pl.program_id(1)   # reduction axis (arbitrary)

    # The (8, LANE) output block is resident across the i axis for a given p:
    # zero it at the start of each p's reduction.
    @pl.when(i == 0)
    def _():
        out_ref[...] = jnp.zeros_like(out_ref)

    x = x_ref[...].astype(jnp.float32)
    y = y_ref[...].astype(jnp.float32)
    diff = x - y
    err = jnp.sqrt(diff * diff + jnp.float32(eps))

    tile_rows, lane = err.shape

    if need_mask:
        # Mask everything past the true element count n: the partially valid
        # last lane-row, boundary-padded tail blocks, and any blocks whose
        # index_map was clamped.  jnp.where is a select, so garbage/NaN in the
        # masked region cannot leak into the sum.
        b = p * steps + i
        row_ids = b * tile_rows + jax.lax.broadcasted_iota(jnp.int32, err.shape, 0)
        full_rows = n // lane
        rem = n % lane
        mask = row_ids < full_rows
        if rem:
            col_ids = jax.lax.broadcasted_iota(jnp.int32, err.shape, 1)
            mask = mask | ((row_ids == full_rows) & (col_ids < rem))
        err = jnp.where(mask, err, jnp.float32(0.0))

    # vreg-shaped accumulation: collapse the tile to (8, LANE) with pure VPU
    # adds (no per-step cross-lane reduce, no masked (1,1) store).
    out_ref[...] += err.reshape(tile_rows // SUBLANE, SUBLANE, lane).sum(axis=0)


def charbonnier_loss(x, y, eps=1e-6, tile_rows=2048, num_parallel=2):
    assert x.shape == y.shape, "x and y must have the same shape"
    n = x.size

    xf = x.reshape(-1)
    yf = y.reshape(-1)

    # Align the flat length to the 128-lane width.  This only copies when
    # n % 128 != 0 (and pads at most 127 elements); the padded region is
    # masked inside the kernel, so no correction term is needed.
    pad = (-n) % LANE
    if pad:
        xf = jnp.pad(xf, (0, pad))
        yf = jnp.pad(yf, (0, pad))
    rows = (n + pad) // LANE

    x2 = xf.reshape(rows, LANE)
    y2 = yf.reshape(rows, LANE)

    sub = _sublane_multiple(x.dtype, y.dtype)
    # ~1 MiB f32 blocks by default; clamp for tiny inputs, keep sublane-aligned.
    tile = max(sub, min(_round_up(tile_rows, sub), _round_up(rows, sub)))
    num_blocks = -(-rows // tile)
    num_parallel = max(1, min(num_parallel, num_blocks))
    steps = -(-num_blocks // num_parallel)

    # Masking needed only if the grid covers more elements than n.
    need_mask = (num_parallel * steps * tile * LANE) != n

    if num_parallel * steps == num_blocks:
        def in_map(p, i):
            return (p * steps + i, 0)
    else:
        def in_map(p, i):
            # Clamp duplicate/overshoot blocks into range; their contribution
            # is zeroed by the in-kernel mask.
            return (jnp.minimum(p * steps + i, num_blocks - 1), 0)

    partials = pl.pallas_call(
        partial(_charbonnier_kernel, eps=float(eps), n=n, steps=steps,
                need_mask=need_mask),
        out_shape=jax.ShapeDtypeStruct((num_parallel * SUBLANE, LANE), jnp.float32),
        grid_spec=pltpu.PrefetchScalarGridSpec(
            num_scalar_prefetch=0,
            grid=(num_parallel, steps),
            in_specs=[
                pl.BlockSpec((tile, LANE), in_map),
                pl.BlockSpec((tile, LANE), in_map),
            ],
            out_specs=pl.BlockSpec((SUBLANE, LANE), lambda p, i: (p, 0)),
        ),
        compiler_params=pltpu.CompilerParams(
            dimension_semantics=("parallel", "arbitrary"),
        ),
    )(x2, y2)

    total = jnp.sum(partials, dtype=jnp.float32)
    return (total / jnp.float32(n)).astype(x.dtype)


def charbonnier_loss_ref(x, y, eps=1e-6):
    diff = x.astype(jnp.float32) - y.astype(jnp.float32)
    return jnp.mean(jnp.sqrt(diff * diff + eps)).astype(x.dtype)


if __name__ == "__main__":
    key = jax.random.PRNGKey(0)
    kx, ky = jax.random.split(key)
    # NCHW, small shapes: batch=2, channels=4, spatial=16x16
    x = jax.random.normal(kx, (2, 4, 16, 16), dtype=jnp.float32)
    y = jax.random.normal(ky, (2, 4, 16, 16), dtype=jnp.float32)

    out = charbonnier_loss(x, y)
    out = jax.block_until_ready(out)

    ref = charbonnier_loss_ref(x, y)
    assert jnp.allclose(out, ref, rtol=1e-5, atol=1e-6), (out, ref)

    print("KERNEL_OK")
</pallas_src>

<mosaic_0001>
module attributes {stable_mosaic.version = 11 : i64} {
  func.func @_charbonnier_kernel(%arg0: i32, %arg1: i32, %arg2: memref<16x128xf32, #tpu.memory_space<vmem>>, %arg3: memref<16x128xf32, #tpu.memory_space<vmem>>, %arg4: memref<8x128xf32, #tpu.memory_space<vmem>>) attributes {dimension_semantics = [#tpu.dimension_semantics<parallel>, #tpu.dimension_semantics<arbitrary>], iteration_bounds = array<i64: 1, 1>, scalar_prefetch = 0 : i64, scratch_operands = 0 : i64, tpu.core_type = #tpu.core_type<tc>, window_params = [{transform_indices = @transform_0, window_bounds = array<i64: 16, 128>}, {transform_indices = @transform_1, window_bounds = array<i64: 16, 128>}, {transform_indices = @transform_2, window_bounds = array<i64: 8, 128>}]} {
    %c0_i32 = arith.constant 0 : i32
    %0 = arith.cmpi eq, %arg1, %c0_i32 : i32
    %1 = arith.extui %0 : i1 to i32
    %c0_i32_0 = arith.constant 0 : i32
    %2 = arith.cmpi ne, %1, %c0_i32_0 : i32
    scf.if %2 {
      %cst_9 = arith.constant 0.000000e+00 : f32
      %15 = vector.broadcast %cst_9 : f32 to vector<8x128xf32>
      %c0_10 = arith.constant 0 : index
      %c0_11 = arith.constant 0 : index
      %16 = vector.load %arg4[%c0_10, %c0_11] : memref<8x128xf32, #tpu.memory_space<vmem>>, vector<8x128xf32>
      tpu.vector_store %arg4[%c0_10, %c0_11], %15 {strides = array<i32>} : memref<8x128xf32, #tpu.memory_space<vmem>>, vector<8x128xf32>,
    } else {
    }
    %c0 = arith.constant 0 : index
    %c0_1 = arith.constant 0 : index
    %3 = vector.load %arg2[%c0, %c0_1] : memref<16x128xf32, #tpu.memory_space<vmem>>, vector<16x128xf32>
    %c0_2 = arith.constant 0 : index
    %c0_3 = arith.constant 0 : index
    %4 = vector.load %arg3[%c0_2, %c0_3] : memref<16x128xf32, #tpu.memory_space<vmem>>, vector<16x128xf32>
    %5 = arith.subf %3, %4 : vector<16x128xf32>
    %6 = arith.mulf %5, %5 : vector<16x128xf32>
    %cst = arith.constant 9.99999997E-7 : f32
    %7 = vector.broadcast %cst : f32 to vector<16x128xf32>
    %8 = arith.addf %6, %7 : vector<16x128xf32>
    %9 = math.sqrt %8 : vector<16x128xf32>
    %c0_4 = arith.constant 0 : index
    %c0_5 = arith.constant 0 : index
    %10 = vector.load %arg4[%c0_4, %c0_5] : memref<8x128xf32, #tpu.memory_space<vmem>>, vector<8x128xf32>
    %11 = vector.shape_cast %9 : vector<16x128xf32> to vector<2x8x128xf32>
    %cst_6 = arith.constant dense<0.000000e+00> : vector<8x128xf32>
    %12 = vector.multi_reduction <add>, %11, %cst_6 [0] : vector<2x8x128xf32> to vector<8x128xf32>
    %13 = arith.addf %10, %12 : vector<8x128xf32>
    %c0_7 = arith.constant 0 : index
    %c0_8 = arith.constant 0 : index
    %14 = vector.load %arg4[%c0_7, %c0_8] : memref<8x128xf32, #tpu.memory_space<vmem>>, vector<8x128xf32>
    tpu.vector_store %arg4[%c0_7, %c0_8], %13 {strides = array<i32>} : memref<8x128xf32, #tpu.memory_space<vmem>>, vector<8x128xf32>,
    return
  }
  func.func @transform_0(%arg0: i32, %arg1: i32) -> (i32, i32) {
    %c1_i32 = arith.constant 1 : i32
    %0 = arith.muli %arg0, %c1_i32 : i32
    %1 = arith.addi %0, %arg1 : i32
    %c0_i32 = arith.constant 0 : i32
    %c0_i32_0 = arith.constant 0 : i32
    return %1, %c0_i32 : i32, i32
  }
  func.func @transform_1(%arg0: i32, %arg1: i32) -> (i32, i32) {
    %c1_i32 = arith.constant 1 : i32
    %0 = arith.muli %arg0, %c1_i32 : i32
    %1 = arith.addi %0, %arg1 : i32
    %c0_i32 = arith.constant 0 : i32
    %c0_i32_0 = arith.constant 0 : i32
    return %1, %c0_i32 : i32, i32
  }
  func.func @transform_2(%arg0: i32, %arg1: i32) -> (i32, i32) {
    %c0_i32 = arith.constant 0 : i32
    %c0_i32_0 = arith.constant 0 : i32
    return %arg0, %c0_i32 : i32, i32
  }
}

</mosaic_0001>

<bundles_post_ra>
// kernel: tpu_custom_call.1
= control target key start
LH: loop header
LB: loop body
LE: loop exit
PB: predicated region body
PF: predicated region fallthrough
CT: control target
= control target key end

     0   :  { %7 = vsyncpa [#allocation3], 0  ;;  %s206_s0 = inlined_call_operand.hbm [shape: f32[16,128], index: 0, kind: input, shape index: {}]   ;;  %s207_s1 = inlined_call_operand.hbm [shape: f32[16,128], index: 1, kind: input, shape index: {}]   ;;  %s208_s2 = inlined_call_operand.hbm [shape: f32[8,128], index: 2, kind: output, shape index: {}]  }
   0x1   :  { %8 = vsyncpa [#allocation6], 0 }
   0x2   :  { %9 = vsyncpa [#allocation4], 0  ;;  %s177_s9 = smov [#allocation2]  }
   0x3   :  { %s19_s10 = sshll.u32 %s177_s9, 4  ;;  %s20_s10 = int_to_ptr.vmem [resolvable:$true] %s19_s10 }
   0x4   :  { %s119_s11 = scalar_lea.vmem %s20_s10, 256  ;;  %p124_p1 = scmp.lt.s32.totalorder %s20_s10, %s20_s10 }
   0x5   :  { %p120_p0 = scmp.ne.s32.totalorder %s20_s10, %s119_s11  ;;  %p125_p2 = scmp.lt.s32.totalorder %s119_s11, %s119_s11 }
   0x7   :  { %p126_p3 = por %p125_p2, %p124_p1 }
   0x9   :  { %p127_p4 = pnand %p126_p3, %p120_p0 }
   0xb   :  { %130 = shalt.err (!%p127_p4)
}
   0xc   :  { %s178_s12 = smov 128   ;;  %s179_s13 = smov 8  }
   0xd   :  { %25 = dma.hbm_to_vmem [thread:$0]  %s206_s0, 256, %s20_s10, [#allocation3], %s178_s12, %s178_s12, %s179_s13  }
   0xe   :  { %s180_s16 = smov [#allocation5]  }
   0xf   :  { %s35_s17 = sshll.u32 %s180_s16, 4  ;;  %s36_s17 = int_to_ptr.vmem [resolvable:$true] %s35_s17 }
  0x10   :  { %s139_s18 = scalar_lea.vmem %s36_s17, 256  ;;  %p144_p6 = scmp.lt.s32.totalorder %s36_s17, %s36_s17 }
  0x11   :  { %p140_p5 = scmp.ne.s32.totalorder %s36_s17, %s139_s18  ;;  %p145_p7 = scmp.lt.s32.totalorder %s139_s18, %s139_s18 }
  0x13   :  { %p146_p8 = por %p145_p7, %p144_p6 }
  0x15   :  { %p147_p9 = pnand %p146_p8, %p140_p5 }
  0x17   :  { %150 = shalt.err (!%p147_p9)
}
  0x18   :  { %41 = dma.hbm_to_vmem [thread:$0]  %s207_s1, 256, %s36_s17, [#allocation6], %s178_s12, %s178_s12, %s179_s13  }
  0x19   :  { %171 = dma.done.wait [#allocation3], 256  }
  0x1a   :  { %172 = vsyncadd [#allocation3], 4294967040 }
  0x1b   :  { %173 = dma.done.wait [#allocation6], 256  }
  0x1c   :  { %174 = vsyncadd [#allocation6], 4294967040  ;;  %v57_v0 = vld [vmem:[#allocation2] sm:$0xff]  ;;  %v58_v1 = vld [vmem:[#allocation2 + $0x8] sm:$0xff]  ;;  %s181_s0 = smov [#allocation7]  }
  0x1d   :  { %v59_v2 = vld [vmem:[#allocation5] sm:$0xff]  ;;  %v60_v3 = vld [vmem:[#allocation5 + $0x8] sm:$0xff]  ;;  %s91_s1 = sshll.u32 %s181_s0, 4  ;;  %s92_s1 = int_to_ptr.vmem [resolvable:$true] %s91_s1 }
  0x1e   :  { %v61_v4 = vsub.f32 %v57_v0, %v59_v2  ;;  %v62_v5 = vsub.f32 %v58_v1, %v60_v3  ;;  %s151_s21 = scalar_lea.vmem %s92_s1, 128  ;;  %p156_p11 = scmp.lt.s32.totalorder %s92_s1, %s92_s1 }
  0x1f   :  { %p152_p10 = scmp.ne.s32.totalorder %s92_s1, %s151_s21  ;;  %p157_p12 = scmp.lt.s32.totalorder %s151_s21, %s151_s21 }
  0x20   :  { %v63_v6 = vmul.f32 %v61_v4, %v61_v4  ;;  %v64_v7 = vmul.f32 %v62_v5, %v62_v5 }
  0x21   :  { %p158_p13 = por %p157_p12, %p156_p11 }
  0x22   :  { %v65_v8 = vadd.f32 1e-06, %v63_v6  ;;  %v66_v9 = vadd.f32 1e-06, %v64_v7 }
  0x23   :  { %p159_p0 = pnand %p158_p13, %p152_p10 }
  0x24   :  { %107 = vrsqrt.f32 %v65_v8  ;;  %vm69_vm0 = vcmp.eq.f32.partialorder %v65_v8, inf  ;;  %v72_v11 = vand.u32 2147483648, %v65_v8  ;;  %vm71_vm1 = vcmp.eq.f32.partialorder %v65_v8, 0.0 }
  0x25   :  { %109 = vrsqrt.f32 %v66_v9  ;;  %vm76_vm2 = vcmp.eq.f32.partialorder %v66_v9, inf  ;;  %v79_v14 = vand.u32 2147483648, %v66_v9  ;;  %vm78_vm3 = vcmp.eq.f32.partialorder %v66_v9, 0.0 }
  0x31   :  { %v108_v10 = vpop.eup %107 }
  0x32   :  { %v110_v12 = vpop.eup %109  ;;  %v68_v13 = vmul.f32 %v108_v10, %v65_v8 }
  0x33   :  { %v75_v15 = vmul.f32 %v110_v12, %v66_v9 }
  0x34   :  { %v70_v16 = vsel %vm69_vm0, %v65_v8, %v68_v13 }
  0x35   :  { %v73_v17 = vsel %vm71_vm1, %v72_v11, %v70_v16  ;;  %v77_v18 = vsel %vm76_vm2, %v66_v9, %v75_v15 }
  0x36   :  { %v80_v19 = vsel %vm78_vm3, %v79_v14, %v77_v18 }
  0x37   :  { %v82_v20 = vadd.f32 %v80_v19, %v73_v17 }
  0x39   :  { %84 = vst [vmem:[#allocation7] sm:$0xff] %v82_v20 }
  0x3a   :  { %162 = shalt.err (!%p159_p0)
}
  0x3b   :  { %94 = dma.vmem_to_hbm [thread:$0]  %s92_s1, 128, %s208_s2, [#allocation4]  }
  0x3c   :  { %175 = dma.done.wait [#allocation4], 128  }
  0x3d   :  { %176 = vsyncadd [#allocation4], 4294967168 }
  0x3e   :  { %98 = vsyncpa [#allocation3], 1 }
  0x3f   :  { %99 = vsyncpa [#allocation6], 1 }
  0x40   :  { %100 = vsyncpa [#allocation4], 1 }

</bundles_post_ra>
